<compile_context>
chip_gen: v6e
topology: v6e:2x2x1
jax: 0.10.0
libtpu: 0.0.40
codegen_flags: <defaults>
</compile_context>

<pallas_src>
import math

import jax
import jax.numpy as jnp
from jax.experimental import pallas as pl
from jax.experimental.pallas import tpu as pltpu


def _round_up(x, m):
    return ((x + m - 1) // m) * m


# ----------------------------- Pallas kernel -------------------------------- #

def _proj_matmul_kernel(x_ref, w_ref, o_ref):
    """Tiled matmul: sinogram = volume_slices @ system_matrix.

    bf16 operands, f32 accumulation directly into the k-resident output tile.
    """
    @pl.when(pl.program_id(2) == 0)
    def _():
        o_ref[...] = jnp.zeros_like(o_ref)

    o_ref[...] += jnp.dot(x_ref[...], w_ref[...],
                          preferred_element_type=jnp.float32)


def pallas_matmul(x, w, *, tm=256, tn=256, tk=512):
    """x: [M, K], w: [K, N] (bf16 preferred) -> [M, N] float32.

    Pads every dimension up to an MXU-friendly tile multiple (zero padding is
    exact for a matmul) and slices the result back down.
    """
    M, K = x.shape
    K2, N = w.shape
    assert K == K2, (K, K2)

    # Clamp default tiles to the 128-aligned problem so tiny problems do not
    # over-pad, while keeping MXU-native multiples of 128 on every axis.
    tm = min(tm, _round_up(M, 128))
    tn = min(tn, _round_up(N, 128))
    tk = min(tk, _round_up(K, 128))

    Mp, Kp, Np = _round_up(M, tm), _round_up(K, tk), _round_up(N, tn)
    if (Mp, Kp) != (M, K):
        x = jnp.pad(x, ((0, Mp - M), (0, Kp - K)))
    if (Kp, Np) != (K, N):
        w = jnp.pad(w, ((0, Kp - K), (0, Np - N)))

    # Double-buffered bf16 inputs + (double-buffered) resident f32 output tile,
    # with 4x headroom, capped well under every generation's physical VMEM.
    est_vmem = 2 * 2 * (tm * tk + tk * tn) + 2 * 4 * tm * tn
    vmem_limit = min(32 * 1024 * 1024, max(4 * est_vmem, 8 * 1024 * 1024))

    # Advisory cost hint so XLA schedules around the custom call sensibly.
    cost = pl.CostEstimate(
        flops=2 * Mp * Np * Kp,
        transcendentals=0,
        bytes_accessed=2 * (Mp * Kp + Kp * Np) + 4 * Mp * Np,
    )

    out = pl.pallas_call(
        _proj_matmul_kernel,
        out_shape=jax.ShapeDtypeStruct((Mp, Np), jnp.float32),
        grid_spec=pltpu.PrefetchScalarGridSpec(
            num_scalar_prefetch=0,
            # i/j parallel, k (reduction) innermost.
            grid=(Mp // tm, Np // tn, Kp // tk),
            in_specs=[
                pl.BlockSpec((tm, tk), lambda i, j, k: (i, k)),
                # Weight stream: read once per row-block (Mp//tm passes).
                # TODO(synk): if DMA is exposed at very large K, switch this
                # spec to pipeline_mode=pl.Buffered(3) rather than shrinking
                # tiles.
                pl.BlockSpec((tk, tn), lambda i, j, k: (k, j)),
            ],
            out_specs=pl.BlockSpec((tm, tn), lambda i, j, k: (i, j)),
        ),
        compiler_params=pltpu.CompilerParams(
            dimension_semantics=("parallel", "parallel", "arbitrary"),
            vmem_limit_bytes=vmem_limit),
        cost_estimate=cost,
    )(x, w)
    return out[:M, :N]


# ------------------------ geometry / system matrix (glue) ------------------- #

def build_parallel_beam_matrix(depth, width, n_angles, n_det):
    """Pixel-driven parallel-beam projection weights. Shape [A, D*W, T].

    TODO(synk): the system matrix is 2-sparse per (voxel, angle); this dense
    one_hot construction (and the dense matmul) only scales to toy sizes.  At
    clinical sizes, replace with a scatter/interpolation kernel driven by
    scalar-prefetched detector-bin indices (PrefetchScalarGridSpec).
    """
    angles = jnp.arange(n_angles, dtype=jnp.float32) * (math.pi / n_angles)
    dz = jnp.arange(depth, dtype=jnp.float32) - (depth - 1) / 2.0
    wx = jnp.arange(width, dtype=jnp.float32) - (width - 1) / 2.0
    yy, xx = jnp.meshgrid(dz, wx, indexing="ij")          # [D, W]
    xx = xx.reshape(-1)
    yy = yy.reshape(-1)                                   # [D*W]
    det_center = (n_det - 1) / 2.0

    def per_angle(theta):
        s = xx * jnp.cos(theta) + yy * jnp.sin(theta) + det_center
        valid = (s >= 0.0) & (s <= n_det - 1)
        i0 = jnp.clip(jnp.floor(s), 0.0, n_det - 1)
        frac = jnp.clip(s - i0, 0.0, 1.0)
        i1 = jnp.clip(i0 + 1.0, 0.0, n_det - 1)
        w0 = (1.0 - frac) * valid
        w1 = frac * valid
        a = (jax.nn.one_hot(i0.astype(jnp.int32), n_det) * w0[:, None]
             + jax.nn.one_hot(i1.astype(jnp.int32), n_det) * w1[:, None])
        return a                                          # [D*W, T]

    return jax.vmap(per_angle)(angles)                    # [A, D*W, T]


# ------------------------------ module forward ------------------------------ #

def projection3d2d_forward(volume, args):
    """volume: [B, D, H, W] float32; args: dict(n_angles, n_det).
    Returns sinogram [B, n_angles, H, n_det] in float32."""
    n_angles = int(args["n_angles"])
    n_det = int(args["n_det"])
    B, D, H, W = volume.shape

    A = build_parallel_beam_matrix(D, W, n_angles, n_det)          # [A, D*W, T]
    weight = jnp.transpose(A, (1, 0, 2)).reshape(D * W, n_angles * n_det)

    x = jnp.transpose(volume, (0, 2, 1, 3)).reshape(B * H, D * W)  # [B*H, D*W]

    # bf16 operands (interpolation weights are in [0, 1]); accumulation is f32.
    sino = pallas_matmul(x.astype(jnp.bfloat16), weight.astype(jnp.bfloat16))
    sino = sino.reshape(B, H, n_angles, n_det)
    # TODO(synk): for large A*T, avoid this full-sinogram HBM round trip by
    # emitting [B, H, A, T] directly (consumer-side indexing); the [B, A, H, T]
    # layout is kept to preserve the original module's output contract.
    return jnp.transpose(sino, (0, 2, 1, 3))                       # [B, A, H, T]


if __name__ == "__main__":
    key = jax.random.PRNGKey(0)
    B, D, H, W = 2, 16, 4, 16
    args = {"n_angles": 8, "n_det": 16}

    volume = jax.random.normal(key, (B, D, H, W), dtype=jnp.float32)

    fwd = jax.jit(lambda v: projection3d2d_forward(v, args))
    sino = jax.block_until_ready(fwd(volume))

    # Reference (plain JAX) for the Pallas matmul hot path, using the same
    # bf16-cast operands so products are bit-identical; accumulation is f32.
    A = build_parallel_beam_matrix(D, W, args["n_angles"], args["n_det"])
    weight = jnp.transpose(A, (1, 0, 2)).reshape(D * W, -1)
    x = jnp.transpose(volume, (0, 2, 1, 3)).reshape(B * H, D * W)
    xb = x.astype(jnp.bfloat16).astype(jnp.float32)
    wb = weight.astype(jnp.bfloat16).astype(jnp.float32)
    ref = (xb @ wb).reshape(B, H, args["n_angles"], args["n_det"])
    ref = jnp.transpose(ref, (0, 2, 1, 3))

    assert sino.shape == (B, args["n_angles"], H, args["n_det"]), sino.shape
    assert sino.dtype == jnp.float32, sino.dtype
    assert jnp.allclose(sino, ref, atol=1e-4, rtol=1e-4), float(
        jnp.max(jnp.abs(sino - ref)))
    print("KERNEL_OK")
</pallas_src>

<mosaic_0001>
module attributes {stable_mosaic.version = 11 : i64} {
  func.func @_proj_matmul_kernel(%arg0: i32, %arg1: i32, %arg2: i32, %arg3: memref<128x256xbf16, #tpu.memory_space<vmem>>, %arg4: memref<256x128xbf16, #tpu.memory_space<vmem>>, %arg5: memref<128x128xf32, #tpu.memory_space<vmem>>) attributes {dimension_semantics = [#tpu.dimension_semantics<parallel>, #tpu.dimension_semantics<parallel>, #tpu.dimension_semantics<arbitrary>], iteration_bounds = array<i64: 1, 1, 1>, scalar_prefetch = 0 : i64, scratch_operands = 0 : i64, tpu.core_type = #tpu.core_type<tc>, window_params = [{transform_indices = @transform_0, window_bounds = array<i64: 128, 256>}, {transform_indices = @transform_1, window_bounds = array<i64: 256, 128>}, {transform_indices = @transform_2, window_bounds = array<i64: 128, 128>}]} {
    %c0_i32 = arith.constant 0 : i32
    %0 = arith.cmpi eq, %arg2, %c0_i32 : i32
    %1 = arith.extui %0 : i1 to i32
    %c0_i32_0 = arith.constant 0 : i32
    %2 = arith.cmpi ne, %1, %c0_i32_0 : i32
    scf.if %2 {
      %cst_8 = arith.constant 0.000000e+00 : f32
      %9 = vector.broadcast %cst_8 : f32 to vector<128x128xf32>
      %c0_9 = arith.constant 0 : index
      %c0_10 = arith.constant 0 : index
      %10 = vector.load %arg5[%c0_9, %c0_10] : memref<128x128xf32, #tpu.memory_space<vmem>>, vector<128x128xf32>
      tpu.vector_store %arg5[%c0_9, %c0_10], %9 {strides = array<i32>} : memref<128x128xf32, #tpu.memory_space<vmem>>, vector<128x128xf32>,
    } else {
    }
    %c0 = arith.constant 0 : index
    %c0_1 = arith.constant 0 : index
    %3 = vector.load %arg5[%c0, %c0_1] : memref<128x128xf32, #tpu.memory_space<vmem>>, vector<128x128xf32>
    %c0_2 = arith.constant 0 : index
    %c0_3 = arith.constant 0 : index
    %4 = vector.load %arg3[%c0_2, %c0_3] : memref<128x256xbf16, #tpu.memory_space<vmem>>, vector<128x256xbf16>
    %c0_4 = arith.constant 0 : index
    %c0_5 = arith.constant 0 : index
    %5 = vector.load %arg4[%c0_4, %c0_5] : memref<256x128xbf16, #tpu.memory_space<vmem>>, vector<256x128xbf16>
    %cst = arith.constant dense<0.000000e+00> : vector<128x128xf32>
    %6 = tpu.matmul %4, %5, %cst {dimension_numbers = #tpu.dot_dimension_numbers<[1], [0], [0], [1], [0, 0, 1, 1], [], []>} : vector<128x256xbf16>, vector<256x128xbf16>, vector<128x128xf32> -> vector<128x128xf32>
    %7 = arith.addf %3, %6 : vector<128x128xf32>
    %c0_6 = arith.constant 0 : index
    %c0_7 = arith.constant 0 : index
    %8 = vector.load %arg5[%c0_6, %c0_7] : memref<128x128xf32, #tpu.memory_space<vmem>>, vector<128x128xf32>
    tpu.vector_store %arg5[%c0_6, %c0_7], %7 {strides = array<i32>} : memref<128x128xf32, #tpu.memory_space<vmem>>, vector<128x128xf32>,
    return
  }
  func.func @transform_0(%arg0: i32, %arg1: i32, %arg2: i32) -> (i32, i32) {
    %c0_i32 = arith.constant 0 : i32
    return %arg0, %arg2 : i32, i32
  }
  func.func @transform_1(%arg0: i32, %arg1: i32, %arg2: i32) -> (i32, i32) {
    %c0_i32 = arith.constant 0 : i32
    return %arg2, %arg1 : i32, i32
  }
  func.func @transform_2(%arg0: i32, %arg1: i32, %arg2: i32) -> (i32, i32) {
    %c0_i32 = arith.constant 0 : i32
    return %arg0, %arg1 : i32, i32
  }
}

</mosaic_0001>

<bundles_post_ra>
// kernel: _lambda_.1
= control target key start
LH: loop header
LB: loop body
LE: loop exit
PB: predicated region body
PF: predicated region fallthrough
CT: control target
= control target key end

     0   :  { %s717_s1 = inlined_call_operand.vmem [shape: bf16[256,128], index: 1, kind: input, shape index: {}]   ;;  %s718_s0 = inlined_call_operand.vmem [shape: bf16[128,256], index: 0, kind: input, shape index: {}]   ;;  %s719_s2 = inlined_call_operand.vmem [shape: f32[128,128], index: 2, kind: output, shape index: {}]  }
   0x1   :  { %v518_v0 = vld [vmem:[%s717_s1 + $0x78] sm:$0xff]   ;;  %v520_v2 = vld [vmem:[%s717_s1 + $0x70] sm:$0xff]   ;;  %v522_v4 = vld [vmem:[%s717_s1 + $0x68] sm:$0xff]  }
   0x2   :  { %v519_v1 = vld [vmem:[%s717_s1 + $0x38] sm:$0xff]   ;;  %437 = vmatprep.subr.bf16.mxu0 %v518_v0  ;;  %501 = vmatprep.subr.bf16.mxu1 %v518_v0  ;;  %v521_v3 = vld [vmem:[%s717_s1 + $0x30] sm:$0xff]   ;;  %v523_v5 = vld [vmem:[%s717_s1 + $0x28] sm:$0xff]  }
   0x3   :  { %438 = vmatpush3.bf16.msra.mxu0 %v519_v1  ;;  %509 = vmatpush3.bf16.msra.mxu1 %v519_v1  ;;  %v524_v6 = vld [vmem:[%s717_s1 + $0x60] sm:$0xff]   ;;  %v526_v8 = vld [vmem:[%s717_s1 + $0x58] sm:$0xff]   ;;  %v528_v10 = vld [vmem:[%s717_s1 + $0x50] sm:$0xff]  }
   0x4   :  { %439 = vmatprep.subr.bf16.mxu0 %v520_v2  ;;  %502 = vmatprep.subr.bf16.mxu1 %v520_v2  ;;  %v525_v7 = vld [vmem:[%s717_s1 + $0x20] sm:$0xff]   ;;  %v527_v9 = vld [vmem:[%s717_s1 + $0x18] sm:$0xff]   ;;  %v529_v13 = vld [vmem:[%s717_s1 + $0x10] sm:$0xff]  }
   0x5   :  { %v536_v11 = vld [vmem:[%s718_s0 + $0x4] ss:$8 sps:$4 sm:$0xff]   ;;  %v534_v18 = vld [vmem:[%s718_s0] ss:$8 sps:$4 sm:$0xff]   ;;  %v540_v20 = vld [vmem:[%s718_s0 + $0x14] ss:$8 sps:$4 sm:$0xff]  }
   0x6   :  { %v539_v12 = vld [vmem:[%s718_s0 + $0x44] ss:$8 sps:$4 sm:$0xff]   ;;  %304 = vmatprep.mubr.bf16.mxu0 %v536_v11  ;;  %v537_v19 = vld [vmem:[%s718_s0 + $0x40] ss:$8 sps:$4 sm:$0xff]   ;;  %v542_v21 = vld [vmem:[%s718_s0 + $0x54] ss:$8 sps:$4 sm:$0xff]  }
   0x7   :  { %440 = vmatpush3.bf16.msra.mxu0 %v521_v3  ;;  %510 = vmatpush3.bf16.msra.mxu1 %v521_v3  ;;  %v530_v14 = vld [vmem:[%s717_s1 + $0x48] sm:$0xff]   ;;  %v532_v16 = vld [vmem:[%s717_s1 + $0x40] sm:$0xff]   ;;  %v544_v22 = vld [vmem:[%s718_s0 + $0x10] ss:$8 sps:$4 sm:$0xff]  }
   0x8   :  { %441 = vmatprep.subr.bf16.mxu0 %v522_v4  ;;  %503 = vmatprep.subr.bf16.mxu1 %v522_v4  ;;  %v531_v15 = vld [vmem:[%s717_s1 + $0x8] sm:$0xff]   ;;  %v533_v17 = vld [vmem:[%s717_s1] sm:$0xff]   ;;  %v545_v23 = vld [vmem:[%s718_s0 + $0x50] ss:$8 sps:$4 sm:$0xff]  }
   0x9   :  { %336 = vmatprep.mubr.bf16.mxu1 %v539_v12  ;;  %v546_v24 = vld [vmem:[%s718_s0 + $0x24] ss:$8 sps:$4 sm:$0xff]   ;;  %v550_v26 = vld [vmem:[%s718_s0 + $0x20] ss:$8 sps:$4 sm:$0xff]   ;;  %v552_v28 = vld [vmem:[%s718_s0 + $0x34] ss:$8 sps:$4 sm:$0xff]  }
   0xa   :  { %v548_v25 = vld [vmem:[%s718_s0 + $0x64] ss:$8 sps:$4 sm:$0xff]   ;;  %v551_v27 = vld [vmem:[%s718_s0 + $0x60] ss:$8 sps:$4 sm:$0xff]   ;;  %v554_v29 = vld [vmem:[%s718_s0 + $0x74] ss:$8 sps:$4 sm:$0xff]  }
   0xb   :  { %442 = vmatpush3.bf16.msra.mxu0 %v523_v5  ;;  %511 = vmatpush3.bf16.msra.mxu1 %v523_v5  ;;  %v556_v30 = vld [vmem:[%s718_s0 + $0x30] ss:$8 sps:$4 sm:$0xff]  }
   0xc   :  { %443 = vmatprep.subr.bf16.mxu0 %v524_v6  ;;  %504 = vmatprep.subr.bf16.mxu1 %v524_v6  ;;  %v557_v31 = vld [vmem:[%s718_s0 + $0x70] ss:$8 sps:$4 sm:$0xff]  }
   0xf   :  { %444 = vmatpush3.bf16.msra.mxu0 %v525_v7  ;;  %512 = vmatpush3.bf16.msra.mxu1 %v525_v7 }
  0x10   :  { %445 = vmatprep.subr.bf16.mxu0 %v526_v8  ;;  %505 = vmatprep.subr.bf16.mxu1 %v526_v8 }
  0x13   :  { %446 = vmatpush3.bf16.msra.mxu0 %v527_v9  ;;  %513 = vmatpush3.bf16.msra.mxu1 %v527_v9 }
  0x14   :  { %447 = vmatprep.subr.bf16.mxu0 %v528_v10  ;;  %506 = vmatprep.subr.bf16.mxu1 %v528_v10 }
  0x17   :  { %448 = vmatpush3.bf16.msra.mxu0 %v529_v13  ;;  %514 = vmatpush3.bf16.msra.mxu1 %v529_v13 }
  0x18   :  { %449 = vmatprep.subr.bf16.mxu0 %v530_v14  ;;  %507 = vmatprep.subr.bf16.mxu1 %v530_v14 }
  0x1b   :  { %450 = vmatpush3.bf16.msra.mxu0 %v531_v15  ;;  %515 = vmatpush3.bf16.msra.mxu1 %v531_v15 }
  0x1c   :  { %451 = vmatprep.subr.bf16.mxu0 %v532_v16  ;;  %508 = vmatprep.subr.bf16.mxu1 %v532_v16 }
  0x1f   :  { %452 = vmatpush3.bf16.msra.mxu0 %v533_v17  ;;  %516 = vmatpush3.bf16.msra.mxu1 %v533_v17 }
  0x22   :  { %305 = vmatmul.mubr.bf16.vlgmr.msra.gmra.mxu0 %v534_v18  ;;  %337 = vmatmul.mubr.bf16.vlgmr.msra.gmra.mxu1 %v537_v19 }
  0x23   :  { %312 = vmatprep.mubr.bf16.mxu0 %v540_v20  ;;  %344 = vmatprep.mubr.bf16.mxu1 %v542_v21 }
  0x2a   :  { %313 = vmatmul.mubr.bf16.gmra.mxu0 %v544_v22  ;;  %345 = vmatmul.mubr.bf16.gmra.mxu1 %v545_v23 }
  0x2b   :  { %320 = vmatprep.mubr.bf16.mxu0 %v546_v24  ;;  %352 = vmatprep.mubr.bf16.mxu1 %v548_v25 }
  0x32   :  { %321 = vmatmul.mubr.bf16.gmra.mxu0 %v550_v26  ;;  %353 = vmatmul.mubr.bf16.gmra.mxu1 %v551_v27 }
  0x33   :  { %328 = vmatprep.mubr.bf16.mxu0 %v552_v28  ;;  %360 = vmatprep.mubr.bf16.mxu1 %v554_v29 }
  0x3a   :  { %329 = vmatmul.mubr.bf16.gmra.mxu0 %v556_v30  ;;  %361 = vmatmul.mubr.bf16.gmra.mxu1 %v557_v31 }
  0xe2   :  { %v453_v32 = vpop.f32.mrf.mxu0  ;;  %v477_v33 = vpop.f32.mrf.mxu1 }
  0xe4   :  { %v454_v34 = vpop.f32.mrf.mxu0  ;;  %v478_v35 = vpop.f32.mrf.mxu1 }
  0xe5   :  { %v455_v36 = vadd.f32 %v454_v34, %v453_v32  ;;  %v479_v37 = vadd.f32 %v478_v35, %v477_v33 }
  0xe6   :  { %v456_v38 = vpop.f32.mrf.mxu0  ;;  %v480_v39 = vpop.f32.mrf.mxu1 }
  0xe7   :  { %385 = vst [vmem:[%s719_s2] sm:$0xff] %v455_v36  ;;  %393 = vst [vmem:[%s719_s2 + $0x40] sm:$0xff] %v479_v37 }
  0xe8   :  { %v457_v40 = vpop.f32.mrf.mxu0  ;;  %v481_v41 = vpop.f32.mrf.mxu1 }
  0xe9   :  { %v458_v42 = vadd.f32 %v457_v40, %v456_v38  ;;  %v482_v43 = vadd.f32 %v481_v41, %v480_v39 }
  0xea   :  { %v459_v44 = vpop.f32.mrf.mxu0  ;;  %v483_v45 = vpop.f32.mrf.mxu1 }
  0xeb   :  { %386 = vst [vmem:[%s719_s2 + $0x8] sm:$0xff] %v458_v42  ;;  %394 = vst [vmem:[%s719_s2 + $0x48] sm:$0xff] %v482_v43 }
  0xec   :  { %v460_v46 = vpop.f32.mrf.mxu0  ;;  %v484_v47 = vpop.f32.mrf.mxu1 }
  0xed   :  { %v461_v48 = vadd.f32 %v460_v46, %v459_v44  ;;  %v485_v49 = vadd.f32 %v484_v47, %v483_v45 }
  0xee   :  { %v462_v50 = vpop.f32.mrf.mxu0  ;;  %v486_v51 = vpop.f32.mrf.mxu1 }
  0xef   :  { %387 = vst [vmem:[%s719_s2 + $0x10] sm:$0xff] %v461_v48  ;;  %395 = vst [vmem:[%s719_s2 + $0x50] sm:$0xff] %v485_v49 }
  0xf0   :  { %v463_v52 = vpop.f32.mrf.mxu0  ;;  %v487_v53 = vpop.f32.mrf.mxu1 }
  0xf1   :  { %v464_v54 = vadd.f32 %v463_v52, %v462_v50  ;;  %v488_v55 = vadd.f32 %v487_v53, %v486_v51 }
  0xf2   :  { %v465_v56 = vpop.f32.mrf.mxu0  ;;  %v489_v57 = vpop.f32.mrf.mxu1 }
  0xf3   :  { %388 = vst [vmem:[%s719_s2 + $0x18] sm:$0xff] %v464_v54  ;;  %396 = vst [vmem:[%s719_s2 + $0x58] sm:$0xff] %v488_v55 }
  0xf4   :  { %v466_v58 = vpop.f32.mrf.mxu0  ;;  %v490_v59 = vpop.f32.mrf.mxu1 }
  0xf5   :  { %v467_v60 = vadd.f32 %v466_v58, %v465_v56  ;;  %v491_v61 = vadd.f32 %v490_v59, %v489_v57 }
  0xf6   :  { %v468_v62 = vpop.f32.mrf.mxu0  ;;  %v492_v63 = vpop.f32.mrf.mxu1 }
  0xf7   :  { %389 = vst [vmem:[%s719_s2 + $0x20] sm:$0xff] %v467_v60  ;;  %397 = vst [vmem:[%s719_s2 + $0x60] sm:$0xff] %v491_v61 }
  0xf8   :  { %v469_v0 = vpop.f32.mrf.mxu0  ;;  %v493_v1 = vpop.f32.mrf.mxu1 }
  0xf9   :  { %v470_v2 = vadd.f32 %v469_v0, %v468_v62  ;;  %v494_v3 = vadd.f32 %v493_v1, %v492_v63 }
  0xfa   :  { %v471_v4 = vpop.f32.mrf.mxu0  ;;  %v495_v5 = vpop.f32.mrf.mxu1 }
  0xfb   :  { %390 = vst [vmem:[%s719_s2 + $0x28] sm:$0xff] %v470_v2  ;;  %398 = vst [vmem:[%s719_s2 + $0x68] sm:$0xff] %v494_v3 }
  0xfc   :  { %v472_v6 = vpop.f32.mrf.mxu0  ;;  %v496_v7 = vpop.f32.mrf.mxu1 }
  0xfd   :  { %v473_v8 = vadd.f32 %v472_v6, %v471_v4  ;;  %v497_v9 = vadd.f32 %v496_v7, %v495_v5 }
  0xfe   :  { %v474_v10 = vpop.f32.mrf.mxu0  ;;  %v498_v11 = vpop.f32.mrf.mxu1 }
  0xff   :  { %391 = vst [vmem:[%s719_s2 + $0x30] sm:$0xff] %v473_v8  ;;  %399 = vst [vmem:[%s719_s2 + $0x70] sm:$0xff] %v497_v9 }
 0x100   :  { %v475_v12 = vpop.f32.mrf.mxu0  ;;  %v499_v13 = vpop.f32.mrf.mxu1 }
 0x101   :  { %v476_v14 = vadd.f32 %v475_v12, %v474_v10  ;;  %v500_v15 = vadd.f32 %v499_v13, %v498_v11 }
 0x103   :  { %392 = vst [vmem:[%s719_s2 + $0x38] sm:$0xff] %v476_v14  ;;  %400 = vst [vmem:[%s719_s2 + $0x78] sm:$0xff] %v500_v15 }

</bundles_post_ra>
